<compile_context>
chip_gen: v5e
topology: v5e:2x2
jax: 0.10.0
libtpu: 0.0.40
codegen_flags: <defaults>
</compile_context>

<pallas_src>
import functools

import jax
import jax.numpy as jnp
from jax.experimental import pallas as pl
from jax.experimental.pallas import tpu as pltpu


_VMEM_LIMIT = 48 * 1024 * 1024          # < v7x physical VMEM, >> default scoped limit
_TILE_BUDGET = 20 * 1024 * 1024          # rough per-call working-set target


# ----------------------------------------------------------------------------
# tile-size helpers
# ----------------------------------------------------------------------------
def _largest_divisor_leq(n, cap):
    cap = max(1, min(n, int(cap)))
    for d in range(cap, 0, -1):
        if n % d == 0:
            return d
    return 1


def _conv_tile_h(H, W, cin, cout, cres, upsample_h):
    out_mult = 2 if upsample_h else 1
    per_row = W * (
        4 * cin                              # centre tile, double-buffered bf16
        + 4 * cres                           # residual tile, double-buffered bf16
        + out_mult * (16 * cin + 8 * cout)   # f32 padded slab + bf16 im2col + out dbuf + f32 acc
    )
    budget = _TILE_BUDGET - 36 * cin * cout  # minus double-buffered bf16 weights
    cap = max(1, budget // max(per_row, 1))
    if H >= 2:
        cap = min(cap, H // 2)               # >= 2 row tiles -> both TCs busy even at B=1
    return _largest_divisor_leq(H, cap)


def _stats_tile_h(H, W, C):
    per_row = max(1, W * C * 12)             # bf16 dbuf + f32 temporaries
    cap = max(1, (16 * 1024 * 1024) // per_row)
    if H >= 2:
        cap = min(cap, H // 2)
    return _largest_divisor_leq(H, cap)


# ----------------------------------------------------------------------------
# GroupNorm statistics kernel (per-channel sum / sum-sq, accumulated over tiles)
# ----------------------------------------------------------------------------
def _gn_stats_kernel(x_ref, o_ref):
    @pl.when(pl.program_id(1) == 0)
    def _():
        o_ref[...] = jnp.zeros_like(o_ref)

    x = x_ref[0].astype(jnp.float32)               # (TH, W, C)
    x2 = x.reshape(-1, x.shape[-1])                # (TH*W, C)
    s = jnp.sum(x2, axis=0)                        # (C,)
    ss = jnp.sum(x2 * x2, axis=0)                  # (C,)
    row = jax.lax.broadcasted_iota(jnp.int32, (2, 1), 0)
    upd = jnp.where(row == 0, s[None, :], ss[None, :])   # (2, C)
    o_ref[...] += upd[None]


def gn_stats(x):
    B, H, W, C = x.shape
    th = _stats_tile_h(H, W, C)
    n_th = H // th
    return pl.pallas_call(
        _gn_stats_kernel,
        out_shape=jax.ShapeDtypeStruct((B, 2, C), jnp.float32),
        grid=(B, n_th),
        in_specs=[pl.BlockSpec((1, th, W, C), lambda b, i: (b, i, 0, 0))],
        out_specs=pl.BlockSpec((1, 2, C), lambda b, i: (b, 0, 0)),
        compiler_params=pltpu.CompilerParams(
            dimension_semantics=("parallel", "arbitrary"),
            vmem_limit_bytes=_VMEM_LIMIT),
    )(x)


def _scale_shift_from_sums(s, ss, gamma, beta, groups, eps, spatial):
    """Turn per-channel sums into per-channel affine (scale, shift) in f32."""
    B, C = s.shape
    assert C % groups == 0
    cpg = C // groups
    n = float(spatial * cpg)
    sg = s.reshape(B, groups, cpg).sum(-1)
    ssg = ss.reshape(B, groups, cpg).sum(-1)
    mean = sg / n
    var = jnp.maximum(ssg / n - mean * mean, 0.0)
    inv = jax.lax.rsqrt(var + eps)
    mean_c = jnp.repeat(mean, cpg, axis=-1)
    inv_c = jnp.repeat(inv, cpg, axis=-1)
    scale = gamma[None, :] * inv_c
    shift = beta[None, :] - mean_c * scale
    return scale, shift


def gn_scale_shift(x, gamma, beta, groups, eps):
    stats = gn_stats(x)                            # Pallas stats pass
    H, W = x.shape[1], x.shape[2]
    scale, shift = _scale_shift_from_sums(
        stats[:, 0], stats[:, 1], gamma, beta, groups, eps, H * W)
    return scale[:, None, :], shift[:, None, :]    # (B, 1, C) f32


# ----------------------------------------------------------------------------
# Fused (GN-apply + SiLU) -> Conv3x3 (+ residual / 1x1 shortcut / 2x H-upsample)
# ----------------------------------------------------------------------------
def _fused_conv_kernel(*refs, th_in, th_out, wd, cin, cres, cout,
                       apply_norm_act, upsample_h, has_res, has_sc):
    it = iter(refs)
    x_ref = next(it)                     # (1, th_in, wd, cin)  centre rows
    xt_ref = next(it)                    # (1, 1, wd, cin)      top halo row
    xb_ref = next(it)                    # (1, 1, wd, cin)      bottom halo row
    scale_ref = next(it) if apply_norm_act else None
    shift_ref = next(it) if apply_norm_act else None
    w_ref = next(it)                     # (3, 3*cin, cout) bf16
    b_ref = next(it)                     # (cout,) f32
    res_ref = next(it) if has_res else None
    scw_ref = next(it) if has_sc else None
    scb_ref = next(it) if has_sc else None
    o_ref = next(it)                     # (1, th_out, wd, cout)

    f32 = jnp.float32
    bf16 = jnp.bfloat16
    i = pl.program_id(1)
    n_i = pl.num_programs(1)

    if apply_norm_act:
        scale = scale_ref[0, 0].astype(f32)        # (cin,)
        shift = shift_ref[0, 0].astype(f32)

    def prep(rows):                                # (k, wd, cin) -> f32, GN+SiLU applied
        y = rows.astype(f32)
        if apply_norm_act:
            y = y * scale + shift
            y = y * jax.nn.sigmoid(y)              # SiLU
        return y

    center = prep(x_ref[0])                        # (th_in, wd, cin)
    top = prep(xt_ref[0, 0][None])                 # (1, wd, cin)
    bot = prep(xb_ref[0, 0][None])
    top = jnp.where(i > 0, top, jnp.zeros_like(top))          # zero pad at image top
    bot = jnp.where(i < n_i - 1, bot, jnp.zeros_like(bot))    # zero pad at image bottom

    if upsample_h:
        # nearest-neighbour 2x along H fused in: duplicate each centre row.
        center = jnp.concatenate([center[:, None], center[:, None]], axis=1)
        center = center.reshape(th_out, wd, cin)

    slab = jnp.concatenate([top, center, bot], axis=0)        # (th_out + 2, wd, cin)

    # Zero-pad W with 8-wide borders (keeps the sublane concat tile-aligned);
    # the three kw taps then read at offsets 7 / 8 / 9 (hoisted once).
    zpad = jnp.zeros((th_out + 2, 8, cin), f32)
    xpw = jnp.concatenate([zpad, slab, zpad], axis=1)         # (th_out + 2, wd + 16, cin)

    acc = jnp.zeros((th_out * wd, cout), f32)
    if cin % 128 == 0:
        # im2col along kw: K = 3*cin fills the MXU far better than K = cin.
        taps = [xpw[:, 7 + kw:7 + kw + wd, :].astype(bf16) for kw in range(3)]
        x3 = jnp.concatenate(taps, axis=-1)                   # (th_out + 2, wd, 3*cin)
        for kh in range(3):
            xk = x3[kh:kh + th_out].reshape(th_out * wd, 3 * cin)
            acc = acc + jnp.dot(xk, w_ref[kh], preferred_element_type=f32)
    else:
        # fallback for non-lane-aligned channel counts: kw shifts still hoisted.
        for kw in range(3):
            sl = xpw[:, 7 + kw:7 + kw + wd, :].astype(bf16)   # (th_out + 2, wd, cin)
            for kh in range(3):
                xk = sl[kh:kh + th_out].reshape(th_out * wd, cin)
                wk = w_ref[kh, kw * cin:(kw + 1) * cin, :]
                acc = acc + jnp.dot(xk, wk, preferred_element_type=f32)

    acc = acc + b_ref[...].astype(f32)[None, :]

    if has_res:
        r = res_ref[0]                                        # (th_out, wd, cres) bf16
        if has_sc:
            rr = r.reshape(th_out * wd, cres)
            acc = acc + jnp.dot(rr, scw_ref[...], preferred_element_type=f32)
            acc = acc + scb_ref[...].astype(f32)[None, :]
        else:
            acc = acc + r.reshape(th_out * wd, cout).astype(f32)

    o_ref[...] = acc.reshape(1, th_out, wd, cout).astype(o_ref.dtype)


def fused_conv3x3(x, w, b, *, scale=None, shift=None, residual=None,
                  shortcut_w=None, shortcut_b=None, upsample_h=False):
    B, H, W, Cin = x.shape
    assert w.shape[:3] == (3, 3, Cin)
    Cout = w.shape[-1]
    apply_norm_act = scale is not None
    has_res = residual is not None
    has_sc = shortcut_w is not None
    assert not has_sc or has_res
    assert not (upsample_h and has_res)
    cres = residual.shape[-1] if has_res else 0

    th = _conv_tile_h(H, W, Cin, Cout, cres, upsample_h)
    n_th = H // th
    th_out = 2 * th if upsample_h else th
    H_out = 2 * H if upsample_h else H

    # weight layout (kh, kw*Cin, Cout) matches the in-kernel im2col channel order
    w3 = w.reshape(3, 3 * Cin, Cout)

    in_specs = [
        pl.BlockSpec((1, th, W, Cin), lambda bb, ii: (bb, ii, 0, 0)),                # centre rows
        pl.BlockSpec((1, 1, W, Cin),
                     lambda bb, ii: (bb, jnp.maximum(ii * th - 1, 0), 0, 0)),        # top halo
        pl.BlockSpec((1, 1, W, Cin),
                     lambda bb, ii: (bb, jnp.minimum((ii + 1) * th, H - 1), 0, 0)),  # bottom halo
    ]
    args = [x, x, x]
    if apply_norm_act:
        in_specs += [pl.BlockSpec((1, 1, Cin), lambda bb, ii: (bb, 0, 0))] * 2
        args += [scale, shift]
    in_specs += [pl.BlockSpec((3, 3 * Cin, Cout), lambda bb, ii: (0, 0, 0)),
                 pl.BlockSpec((Cout,), lambda bb, ii: (0,))]
    args += [w3, b]
    if has_res:
        in_specs.append(pl.BlockSpec((1, th, W, cres), lambda bb, ii: (bb, ii, 0, 0)))
        args.append(residual)
        if has_sc:
            in_specs += [pl.BlockSpec((cres, Cout), lambda bb, ii: (0, 0)),
                         pl.BlockSpec((Cout,), lambda bb, ii: (0,))]
            args += [shortcut_w, shortcut_b]

    kernel = functools.partial(
        _fused_conv_kernel, th_in=th, th_out=th_out, wd=W, cin=Cin, cres=cres,
        cout=Cout, apply_norm_act=apply_norm_act, upsample_h=upsample_h,
        has_res=has_res, has_sc=has_sc)

    return pl.pallas_call(
        kernel,
        out_shape=jax.ShapeDtypeStruct((B, H_out, W, Cout), jnp.bfloat16),
        grid=(B, n_th),
        in_specs=in_specs,
        out_specs=pl.BlockSpec((1, th_out, W, Cout), lambda bb, ii: (bb, ii, 0, 0)),
        compiler_params=pltpu.CompilerParams(
            dimension_semantics=("parallel", "parallel"),
            vmem_limit_bytes=_VMEM_LIMIT),
    )(*args)


# ----------------------------------------------------------------------------
# Module-level forward (glue)
# ----------------------------------------------------------------------------
def resnet_block_forward(x, p, *, groups=32, eps=1e-6):
    sc1, sh1 = gn_scale_shift(x, p["norm1_gamma"], p["norm1_beta"], groups, eps)
    h = fused_conv3x3(x, p["conv1_w"], p["conv1_b"], scale=sc1, shift=sh1)
    sc2, sh2 = gn_scale_shift(h, p["norm2_gamma"], p["norm2_beta"], groups, eps)
    return fused_conv3x3(h, p["conv2_w"], p["conv2_b"], scale=sc2, shift=sh2,
                         residual=x,
                         shortcut_w=p.get("shortcut_w"),
                         shortcut_b=p.get("shortcut_b"))


def upsample2d_forward(x, p):
    # nearest-neighbour 2x: H duplication is fused into the conv kernel,
    # W duplication stays in glue.
    # TODO(synk): also fuse the W duplication into the conv input path.
    xw = jnp.repeat(x, 2, axis=2)
    return fused_conv3x3(xw, p["conv_w"], p["conv_b"], upsample_h=True)


def up_decoder_block_forward(x_nhwc, params, *, groups=32, eps=1e-6):
    """Mirrors TtUpDecoderBlock2D.forward; returns (hidden_states, [C, H, W])."""
    h = x_nhwc
    for p in params["resnets"]:
        h = resnet_block_forward(h, p, groups=groups, eps=eps)
    if params.get("upsampler") is not None:
        h = upsample2d_forward(h, params["upsampler"])
    B, H, W, C = h.shape
    return h, [C, H, W]


# ----------------------------------------------------------------------------
# Deterministic parameter initialization (synthetic weights, no checkpoint)
# ----------------------------------------------------------------------------
def init_resnet_params(key, c_in, c_out, conv_shortcut):
    ks = jax.random.split(key, 10)
    f32, bf16 = jnp.float32, jnp.bfloat16
    p = {
        "norm1_gamma": 1.0 + 0.02 * jax.random.normal(ks[0], (c_in,), f32),
        "norm1_beta": 0.02 * jax.random.normal(ks[1], (c_in,), f32),
        "conv1_w": (0.05 * jax.random.normal(ks[2], (3, 3, c_in, c_out), f32)).astype(bf16),
        "conv1_b": 0.02 * jax.random.normal(ks[3], (c_out,), f32),
        "norm2_gamma": 1.0 + 0.02 * jax.random.normal(ks[4], (c_out,), f32),
        "norm2_beta": 0.02 * jax.random.normal(ks[5], (c_out,), f32),
        "conv2_w": (0.05 * jax.random.normal(ks[6], (3, 3, c_out, c_out), f32)).astype(bf16),
        "conv2_b": 0.02 * jax.random.normal(ks[7], (c_out,), f32),
    }
    if conv_shortcut:
        p["shortcut_w"] = (0.05 * jax.random.normal(ks[8], (c_in, c_out), f32)).astype(bf16)
        p["shortcut_b"] = 0.02 * jax.random.normal(ks[9], (c_out,), f32)
    return p


def init_block_params(key, c_in, c_out, *, num_layers=3, has_upsample=False,
                      conv_shortcut=False):
    keys = jax.random.split(key, num_layers + 1)
    resnets = []
    for i in range(num_layers):
        ci = c_in if i == 0 else c_out
        resnets.append(init_resnet_params(keys[i], ci, c_out,
                                          conv_shortcut and i == 0))
    params = {"resnets": resnets, "upsampler": None}
    if has_upsample:
        ku = jax.random.split(keys[-1], 2)
        params["upsampler"] = {
            "conv_w": (0.05 * jax.random.normal(ku[0], (3, 3, c_out, c_out),
                                                jnp.float32)).astype(jnp.bfloat16),
            "conv_b": 0.02 * jax.random.normal(ku[1], (c_out,), jnp.float32),
        }
    return params


# ----------------------------------------------------------------------------
# Pure-JAX reference (same bf16 cast points -> tight correctness check)
# ----------------------------------------------------------------------------
def _ref_scale_shift(x, gamma, beta, groups, eps):
    xf = x.astype(jnp.float32)
    s = xf.sum((1, 2))
    ss = (xf * xf).sum((1, 2))
    return _scale_shift_from_sums(s, ss, gamma, beta, groups, eps,
                                  x.shape[1] * x.shape[2])


def _ref_norm_silu(x, scale, shift):
    y = x.astype(jnp.float32) * scale[:, None, None, :] + shift[:, None, None, :]
    y = y * jax.nn.sigmoid(y)
    return y.astype(jnp.bfloat16)


def _ref_conv3x3(x, w, b):
    y = jax.lax.conv_general_dilated(
        x, w, window_strides=(1, 1), padding="SAME",
        dimension_numbers=("NHWC", "HWIO", "NHWC"),
        preferred_element_type=jnp.float32)
    return y + b


def _ref_forward(x, params, groups, eps):
    h = x
    for p in params["resnets"]:
        res = h
        sc1, sh1 = _ref_scale_shift(h, p["norm1_gamma"], p["norm1_beta"], groups, eps)
        t = _ref_norm_silu(h, sc1, sh1)
        t = _ref_conv3x3(t, p["conv1_w"], p["conv1_b"]).astype(jnp.bfloat16)
        sc2, sh2 = _ref_scale_shift(t, p["norm2_gamma"], p["norm2_beta"], groups, eps)
        t2 = _ref_norm_silu(t, sc2, sh2)
        t2 = _ref_conv3x3(t2, p["conv2_w"], p["conv2_b"])
        if "shortcut_w" in p:
            r = jnp.einsum("bhwc,cd->bhwd", res, p["shortcut_w"],
                           preferred_element_type=jnp.float32) + p["shortcut_b"]
        else:
            r = res.astype(jnp.float32)
        h = (t2 + r).astype(jnp.bfloat16)
    if params.get("upsampler") is not None:
        u = params["upsampler"]
        h = jnp.repeat(jnp.repeat(h, 2, axis=1), 2, axis=2)
        h = _ref_conv3x3(h, u["conv_w"], u["conv_b"]).astype(jnp.bfloat16)
    return h


# ----------------------------------------------------------------------------
# Demo
# ----------------------------------------------------------------------------
if __name__ == "__main__":
    key = jax.random.PRNGKey(0)
    k_x, k_p = jax.random.split(key)

    # NCHW like the PyTorch module; small but lane-aligned channels (VAE-style).
    B, C, H, W = 2, 128, 16, 16
    groups, eps = 32, 1e-6

    x_nchw = jax.random.normal(k_x, (B, C, H, W), jnp.float32)
    x_nhwc = jnp.transpose(x_nchw, (0, 2, 3, 1)).astype(jnp.bfloat16)  # glue: NCHW -> NHWC bf16

    params = init_block_params(k_p, C, C, num_layers=3,
                               has_upsample=True, conv_shortcut=True)

    out, (C_out, H_out, W_out) = up_decoder_block_forward(
        x_nhwc, params, groups=groups, eps=eps)
    out = jax.block_until_ready(out)

    assert out.shape == (B, H_out, W_out, C_out) == (B, 2 * H, 2 * W, C)

    ref = jax.block_until_ready(_ref_forward(x_nhwc, params, groups, eps))
    out_f = out.astype(jnp.float32)
    ref_f = ref.astype(jnp.float32)
    max_err = float(jnp.max(jnp.abs(out_f - ref_f)))
    assert bool(jnp.all(jnp.isfinite(out_f))), "non-finite output"
    assert bool(jnp.allclose(out_f, ref_f, rtol=5e-2, atol=5e-2)), max_err

    print("KERNEL_OK")
</pallas_src>

<mosaic_0001>
module attributes {stable_mosaic.version = 11 : i64} {
  func.func @_gn_stats_kernel(%arg0: i32, %arg1: i32, %arg2: memref<1x8x16x128xbf16, #tpu.memory_space<vmem>>, %arg3: memref<1x2x128xf32, #tpu.memory_space<vmem>>) attributes {dimension_semantics = [#tpu.dimension_semantics<parallel>, #tpu.dimension_semantics<arbitrary>], iteration_bounds = array<i64: 2, 2>, scalar_prefetch = 0 : i64, scratch_operands = 0 : i64, tpu.core_type = #tpu.core_type<tc>, window_params = [{transform_indices = @transform_0, window_bounds = array<i64: 1, 8, 16, 128>}, {transform_indices = @transform_1, window_bounds = array<i64: 1, 2, 128>}]} {
    %c0_i32 = arith.constant 0 : i32
    %0 = arith.cmpi eq, %arg1, %c0_i32 : i32
    %1 = arith.extui %0 : i1 to i32
    %c0_i32_0 = arith.constant 0 : i32
    %2 = arith.cmpi ne, %1, %c0_i32_0 : i32
    scf.if %2 {
      %cst_12 = arith.constant 0.000000e+00 : f32
      %26 = vector.broadcast %cst_12 : f32 to vector<1x2x128xf32>
      %c0_13 = arith.constant 0 : index
      %c0_14 = arith.constant 0 : index
      %c0_15 = arith.constant 0 : index
      %27 = vector.load %arg3[%c0_13, %c0_14, %c0_15] : memref<1x2x128xf32, #tpu.memory_space<vmem>>, vector<1x2x128xf32>
      tpu.vector_store %arg3[%c0_13, %c0_14, %c0_15], %26 {strides = array<i32>} : memref<1x2x128xf32, #tpu.memory_space<vmem>>, vector<1x2x128xf32>,
    } else {
    }
    %c0 = arith.constant 0 : index
    %c0_1 = arith.constant 0 : index
    %c0_2 = arith.constant 0 : index
    %c0_3 = arith.constant 0 : index
    %3 = vector.load %arg2[%c0, %c0_1, %c0_2, %c0_3] : memref<1x8x16x128xbf16, #tpu.memory_space<vmem>>, vector<1x8x16x128xbf16>
    %4 = vector.shape_cast %3 : vector<1x8x16x128xbf16> to vector<8x16x128xbf16>
    %5 = arith.extf %4 : vector<8x16x128xbf16> to vector<8x16x128xf32>
    %6 = vector.shape_cast %5 : vector<8x16x128xf32> to vector<128x128xf32>
    %cst = arith.constant dense<0.000000e+00> : vector<128xf32>
    %7 = vector.multi_reduction <add>, %6, %cst [0] : vector<128x128xf32> to vector<128xf32>
    %8 = arith.mulf %6, %6 : vector<128x128xf32>
    %cst_4 = arith.constant dense<0.000000e+00> : vector<128xf32>
    %9 = vector.multi_reduction <add>, %8, %cst_4 [0] : vector<128x128xf32> to vector<128xf32>
    %10 = tpu.iota {dimensions = array<i32: 0>} : vector<2x1xi32>
    %c0_i32_5 = arith.constant 0 : i32
    %11 = vector.broadcast %c0_i32_5 : i32 to vector<2x1xi32>
    %12 = arith.cmpi eq, %10, %11 : vector<2x1xi32>
    %13 = vector.shape_cast %7 : vector<128xf32> to vector<1x128xf32>
    %14 = vector.shape_cast %9 : vector<128xf32> to vector<1x128xf32>
    %15 = vector.shape_cast %12 : vector<2x1xi1> to vector<2x1xi1>
    %16 = vector.broadcast %15 : vector<2x1xi1> to vector<2x128xi1>
    %17 = vector.shape_cast %13 : vector<1x128xf32> to vector<1x128xf32>
    %18 = vector.broadcast %17 : vector<1x128xf32> to vector<2x128xf32>
    %19 = vector.shape_cast %14 : vector<1x128xf32> to vector<1x128xf32>
    %20 = vector.broadcast %19 : vector<1x128xf32> to vector<2x128xf32>
    %21 = arith.select %16, %18, %20 : vector<2x128xi1>, vector<2x128xf32>
    %c0_6 = arith.constant 0 : index
    %c0_7 = arith.constant 0 : index
    %c0_8 = arith.constant 0 : index
    %22 = vector.load %arg3[%c0_6, %c0_7, %c0_8] : memref<1x2x128xf32, #tpu.memory_space<vmem>>, vector<1x2x128xf32>
    %23 = vector.shape_cast %21 : vector<2x128xf32> to vector<1x2x128xf32>
    %24 = arith.addf %22, %23 : vector<1x2x128xf32>
    %c0_9 = arith.constant 0 : index
    %c0_10 = arith.constant 0 : index
    %c0_11 = arith.constant 0 : index
    %25 = vector.load %arg3[%c0_9, %c0_10, %c0_11] : memref<1x2x128xf32, #tpu.memory_space<vmem>>, vector<1x2x128xf32>
    tpu.vector_store %arg3[%c0_9, %c0_10, %c0_11], %24 {strides = array<i32>} : memref<1x2x128xf32, #tpu.memory_space<vmem>>, vector<1x2x128xf32>,
    return
  }
  func.func @transform_0(%arg0: i32, %arg1: i32) -> (i32, i32, i32, i32) {
    %c0_i32 = arith.constant 0 : i32
    %c0_i32_0 = arith.constant 0 : i32
    %c0_i32_1 = arith.constant 0 : i32
    return %arg0, %arg1, %c0_i32, %c0_i32_0 : i32, i32, i32, i32
  }
  func.func @transform_1(%arg0: i32, %arg1: i32) -> (i32, i32, i32) {
    %c0_i32 = arith.constant 0 : i32
    %c0_i32_0 = arith.constant 0 : i32
    %c0_i32_1 = arith.constant 0 : i32
    return %arg0, %c0_i32, %c0_i32_0 : i32, i32, i32
  }
}

</mosaic_0001>

<bundles_post_ra>
// kernel: tpu_custom_call.1
= control target key start
LH: loop header
LB: loop body
LE: loop exit
PB: predicated region body
PF: predicated region fallthrough
CT: control target
= control target key end

     0   :  { %6 = vsyncpa [#allocation3], 0  ;;  %s875_s0 = inlined_call_operand.hbm [shape: bf16[2,16,16,128], index: 0, kind: input, shape index: {}]   ;;  %s876_s1 = inlined_call_operand.hbm [shape: f32[2,2,128], index: 1, kind: output, shape index: {}]  }
   0x1   :  { %8 = vsyncpa [#allocation3 + $0x1], 0 }
   0x2   :  { %9 = vsyncpa [#allocation4], 0 }
   0x3   :  { %11 = vsyncpa [#allocation4 + $0x1], 0  ;;  %s688_s6 = smov 0   ;;  %s690_s7 = smov 0  }
   0x4   :  { %s692_s8 = smov 0   ;;  %s694_s9 = smov 0  }
   0x5   :  { %s696_s10 = smov 0   ;;  %s698_s11 = smov 0  }
   0x6   :  { %s700_s12 = smov 0   ;;  %s702_s13 = smov 0  }
   0x7   :  { %s704_s14 = smov 0   ;;  %s706_s15 = smov 0  }
   0x8   :  { %s708_s16 = smov 0  }
   0x9 LB: > { %880 = sst [smem:[#allocation8_spill]] %s653_s11  ;;  %s359_s17 = sadd.s32 4294967295, %s673_s16   ;;  %s673_s16 = sphi %s708_s16, %s17_s16   ;;  %s669_s15 = sphi %s706_s15, %s900_s15   ;;  %s665_s14 = sphi %s704_s14, %s899_s14   ;;  %s661_s13 = sphi %s702_s13, %s898_s13   ;;  %s657_s12 = sphi %s700_s12, %s897_s12   ;;  %s653_s11 = sphi %s698_s11, %s889_s11   ;;  %s649_s10 = sphi %s696_s10, %s896_s10   ;;  %s645_s9 = sphi %s694_s9, %s895_s9   ;;  %s641_s8 = sphi %s692_s8, %s894_s8   ;;  %s637_s7 = sphi %s690_s7, %s893_s7   ;;  %s633_s6 = sphi %s688_s6, %s892_s6  }
   0xa   : > { %s360_s18 = sadd.s32 4294967294, %s673_s16   ;;  %s26_s19 = sadd.s32 1, %s665_s14 }
   0xb   : > { %s29_s20 = sadd.s32 1, %s669_s15  ;;  %p27_p0 = scmp.ge.s32.totalorder %s26_s19, 2 }
   0xc   : > { %s38_s21 = sadd.s32 1, %s653_s11  ;;  %p45_p1 = scmp.ne.s32.totalorder %s653_s11, %s649_s10 }
   0xd   : > { %p46_p2 = scmp.eq.s32.totalorder %s673_s16, 0  ;;  %s902_s19 = smov (%p27_p0, %s26_s19), 0 }
   0xe   : > { %881 = sst [smem:[#allocation9_spill]] %s902_s19  ;;  %s904_s20 = smov (!%p27_p0, %s29_s20), %s669_s15 }
   0xf   : > { %s34_s22 = ssub.s32 %s665_s14, %s902_s19  ;;  %p754_p3 = por %p46_p2, %p45_p1 }
  0x10   : > { %p31_p4 = scmp.ge.s32.totalorder %s904_s20, 2  ;;  %p51_p5 = scmp.ne.s32.totalorder %s649_s10, %s645_s9 }
  0x11   : > { %p52_p6 = scmp.eq.s32.totalorder %s359_s17, 0  ;;  %s64_s24 = sadd.s32 1, %s641_s8 }
  0x12   : > { %s906_s20 = smov (%p31_p4, %s904_s20), 0  ;;  %p74_p8 = scmp.ne.s32.totalorder %s641_s8, %s637_s7 }
  0x13   : > { %883 = sst [smem:[#allocation10_spill]] %s906_s20  ;;  %p762_p7 = por %p52_p6, %p51_p5 }
  0x14   : > { %s33_s26 = ssub.s32 %s669_s15, %s906_s20  ;;  %p75_p9 = scmp.eq.s32.totalorder %s359_s17, 3 }
  0x15   : > { %s35_s27 = sor.u32 %s34_s22, %s33_s26  ;;  %p62_p10 = scmp.eq.s32.totalorder %s33_s26, 0 }
  0x16   : > { %p36_p11 = scmp.eq.s32.totalorder %s35_s27, 0  ;;  %p770_p12 = por %p75_p9, %p74_p8 }
  0x17   : > { %s775_s29 = scalar_select %p62_p10, %s641_s8, %s64_s24  }
  0x18   : > { %s778_s30 = scalar_select %p36_p11, %s653_s11, %s38_s21  }
  0x19   : > { %p80_p13 = scmp.ne.s32.totalorder %s637_s7, %s633_s6  ;;  %p81_p0 = scmp.eq.s32.totalorder %s360_s18, 3 }
  0x1a   : > { %886 = sst [smem:[#allocation11_spill]] %s778_s30  ;;  %p428_p1 = scmp.lt.s32.totalorder %s673_s16, 4 }
  0x1b   : > { %p783_p2 = por %p81_p0, %p80_p13  ;;  %s101_s3 = sand.u32 1, %s653_s11  }
  0x1c   : > { %s363_s4 = sshll.u32 %s101_s3, 6  ;;  %s376_s5 = sshll.u32 %s665_s14, 4 }
  0x1d   : > { %s366_s9 = sshll.u32 %s669_s15, 5  ;;  %s105_s17 = scalar_lea.vmem [#allocation2], %s363_s4 }
  0x1e   : > { %s116_s22 = sshll.u32 %s105_s17, 4  ;;  %s111_s26 = sadd.s32 %s376_s5, %s366_s9  ;;  %s117_s22 = int_to_ptr.vmem [resolvable:$true] %s116_s22 }
  0x1f   : > { %s367_s24 = sshll.u32 %s111_s26, 2  ;;  %p421_p4 = pnand %p428_p1, %p754_p3 }
  0x20   : > { %s113_s27 = scalar_lea.hbm %s875_s0, %s367_s24  ;;  %s102_s19 = scalar_lea.sflag [#allocation3], %s101_s3 }
  0x21   : > { %s114_s20 = sshll.u32 %s113_s27, 4  ;;  %s675_s30 = smov 64   ;;  %s115_s20 = int_to_ptr.hbm [resolvable:$true] %s114_s20 }
  0x22   : > { %s676_s11 = smov 4   ;;  %p368_p5 = scmp.ge.s32.totalorder %s673_s16, 1 }
  0x23   : > { %423 = dma.hbm_to_vmem [thread:$0]  (!%p421_p4), %s115_s20, 1024, %s117_s22, %s102_s19, %s675_s30, %s675_s30, %s676_s11  }
  0x24   : > { %p124_p6 = scmp.lt.s32.totalorder %s673_s16, 5 }
  0x26   : > { %p125_p8 = pnand %p368_p5, %p124_p6 }
  0x27   : > { %s130_s4 = sand.u32 (!%p125_p8), 1, %s649_s10  }
  0x28   : > { %128 = sbr.rel (%p125_p8) target bundleno = 108 (0x6c), region = 24  ;;  %s369_s5 = sshll.u32 (!%p125_p8), %s130_s4, 6 }
  0x29   : > { %s131_s23 = scalar_lea.sflag (!%p125_p8), [#allocation3], %s130_s4  ;;  %s798_s9 = scalar_lea.vmem (!%p125_p8), [#allocation2], %s369_s5 }
  0x2d   : > { %624 = dma.done.wait (%p762_p7), %s131_s23, 1024  }
  0x2e   : > { %626 = vsyncadd (%p762_p7), %s131_s23, 4294966272  ;;  %s151_s3 = sand.u32 1, %s637_s7   ;;  %p371_p3 = scmp.ne.s32.totalorder %s657_s12, 0 }
  0x2f   : > { %s370_s11 = sshll.u32 %s151_s3, 1 }
  0x30   : > { %s807_s19 = scalar_lea.vmem [#allocation5], %s370_s11  ;;  %158 = sbr.rel (%p371_p3) target bundleno = 55 (0x37), region = 32 }
  0x35   : > { %v677_v0 = vmov 0.0  }
  0x36   : > { %159 = vst [vmem:[%s807_s19] sm:$0x3] %v677_v0 }
  0x37 PF: > { %v378_v1 = vld [vmem:[%s798_s9] sm:$0xff]   ;;  %v409_v2 = vld [vmem:[%s798_s9 + $0x8] sm:$0xff]   ;;  %v410_v6 = vld [vmem:[%s798_s9 + $0x10] sm:$0xff]   ;;  %s373_s12 = sshll.u32 %s661_s13, 1  ;;  %s272_s17 = sshll.u32 %s807_s19, 4  ;;  %s273_s17 = int_to_ptr.vmem [resolvable:$true] %s272_s17 }
  0x38   : > { %v379_v3 = vunpack.c.l.bf16 %v378_v1  ;;  %v380_v4 = vunpack.c.h.bf16 %v378_v1  ;;  %v383_v5 = vunpack.c.l.bf16 %v409_v2  ;;  %v384_v7 = vunpack.c.h.bf16 %v409_v2  ;;  %v411_v14 = vld [vmem:[%s798_s9 + $0x18] sm:$0xff]   ;;  %v412_v23 = vld [vmem:[%s798_s9 + $0x20] sm:$0xff]   ;;  %v413_v32 = vld [vmem:[%s798_s9 + $0x28] sm:$0xff]   ;;  %s270_s30 = scalar_lea.hbm %s876_s1, %s373_s12  ;;  %s260_s13 = scalar_lea.sflag [#allocation4], %s151_s3 }
  0x39   : > { %v387_v11 = vunpack.c.l.bf16 %v410_v6  ;;  %v388_v15 = vunpack.c.h.bf16 %v410_v6  ;;  %v391_v19 = vunpack.c.l.bf16 %v411_v14  ;;  %v392_v24 = vunpack.c.h.bf16 %v411_v14  ;;  %v414_v41 = vld [vmem:[%s798_s9 + $0x30] sm:$0xff]   ;;  %v415_v50 = vld [vmem:[%s798_s9 + $0x38] sm:$0xff]   ;;  %s274_s22 = sshll.u32 %s270_s30, 4  ;;  %s571_s27 = scalar_lea.hbm %s876_s1, 4  ;;  %s275_s22 = int_to_ptr.hbm [resolvable:$true] %s274_s22 }
  0x3a   : > { %v192_v8 = vadd.f32 %v380_v4, %v379_v3  ;;  %v213_v9 = vmul.f32 %v379_v3, %v379_v3  ;;  %v214_v10 = vmul.f32 %v380_v4, %v380_v4  ;;  %v215_v13 = vmul.f32 %v383_v5, %v383_v5  ;;  %s565_s26 = sshra.s32 %s275_s22, 4  ;;  %s566_s26 = int_to_ptr.hbm [resolvable:$true] %s565_s26 }
  0x3b   : > { %v216_v17 = vmul.f32 %v384_v7, %v384_v7  ;;  %v217_v21 = vmul.f32 %v387_v11, %v387_v11  ;;  %v218_v26 = vmul.f32 %v388_v15, %v388_v15  ;;  %v395_v28 = vunpack.c.l.bf16 %v412_v23  ;;  %s567_s24 = scalar_lea.hbm %s566_s26, 2  ;;  %p572_p11 = scmp.lt.s32.totalorder %s566_s26, %s876_s1 }
  0x3c   : > { %v193_v12 = vadd.f32 %v383_v5, %v192_v8  ;;  %v229_v18 = vadd.f32 %v214_v10, %v213_v9  ;;  %v219_v30 = vmul.f32 %v391_v19, %v391_v19  ;;  %v396_v33 = vunpack.c.h.bf16 %v412_v23  ;;  %p568_p7 = scmp.ne.s32.totalorder %s566_s26, %s567_s24  ;;  %p573_p13 = scmp.lt.s32.totalorder %s571_s27, %s567_s24 }
  0x3d   : > { %v220_v35 = vmul.f32 %v392_v24, %v392_v24  ;;  %v399_v37 = vunpack.c.l.bf16 %v413_v32  ;;  %v221_v39 = vmul.f32 %v395_v28, %v395_v28  ;;  %v400_v42 = vunpack.c.h.bf16 %v413_v32 }
  0x3e   : > { %v194_v16 = vadd.f32 %v384_v7, %v193_v12  ;;  %v230_v22 = vadd.f32 %v229_v18, %v215_v13  ;;  %v222_v44 = vmul.f32 %v396_v33, %v396_v33  ;;  %v403_v46 = vunpack.c.l.bf16 %v414_v41  ;;  %p569_p9 = pnand %p568_p7, %p770_p12  ;;  %p574_p0 = por %p573_p13, %p572_p11 }
  0x3f   : > { %v223_v48 = vmul.f32 %v399_v37, %v399_v37  ;;  %v404_v51 = vunpack.c.h.bf16 %v414_v41  ;;  %v224_v53 = vmul.f32 %v400_v42, %v400_v42  ;;  %v407_v55 = vunpack.c.l.bf16 %v415_v50 }
  0x40   : > { %v195_v20 = vadd.f32 %v387_v11, %v194_v16  ;;  %v231_v27 = vadd.f32 %v230_v22, %v216_v17  ;;  %v225_v57 = vmul.f32 %v403_v46, %v403_v46  ;;  %v408_v59 = vunpack.c.h.bf16 %v415_v50  ;;  %p570_p10 = pneg %p569_p9 }
  0x41   : > { %v226_v61 = vmul.f32 %v404_v51, %v404_v51  ;;  %v227_v0 = vmul.f32 %v407_v55, %v407_v55  ;;  %v250_v11 = vlaneseq }
  0x42   : > { %v196_v25 = vadd.f32 %v388_v15, %v195_v20  ;;  %v232_v31 = vadd.f32 %v231_v27, %v217_v21  ;;  %v228_v3 = vmul.f32 %v408_v59, %v408_v59  ;;  %v256_v21 = vld [vmem:[%s807_s19] sm:$0x3]  ;;  %p575_p1 = pnand %p574_p0, %p570_p10 }
  0x43   : > { %v251_v16 = vshrl.u32 %v250_v11, 7 }
  0x44   : > { %v197_v29 = vadd.f32 %v391_v19, %v196_v25  ;;  %v233_v36 = vadd.f32 %v232_v31, %v218_v26 }
  0x45   : > { %vm252_vm0 = vcmp.eq.s32.totalorder %v251_v16, 0 }
  0x46   : > { %v198_v34 = vadd.f32 %v392_v24, %v197_v29  ;;  %v234_v40 = vadd.f32 %v233_v36, %v219_v30 }
  0x48   : > { %v199_v38 = vadd.f32 %v395_v28, %v198_v34  ;;  %v235_v45 = vadd.f32 %v234_v40, %v220_v35 }
  0x4a   : > { %v200_v43 = vadd.f32 %v396_v33, %v199_v38  ;;  %v236_v49 = vadd.f32 %v235_v45, %v221_v39 }
  0x4c   : > { %v201_v47 = vadd.f32 %v399_v37, %v200_v43  ;;  %v237_v54 = vadd.f32 %v236_v49, %v222_v44 }
  0x4e   : > { %v202_v52 = vadd.f32 %v400_v42, %v201_v47  ;;  %v238_v58 = vadd.f32 %v237_v54, %v223_v48 }
  0x50   : > { %v203_v56 = vadd.f32 %v403_v46, %v202_v52  ;;  %v239_v62 = vadd.f32 %v238_v58, %v224_v53 }
  0x52   : > { %v204_v60 = vadd.f32 %v404_v51, %v203_v56  ;;  %v240_v1 = vadd.f32 %v239_v62, %v225_v57 }
  0x54   : > { %v205_v63 = vadd.f32 %v407_v55, %v204_v60  ;;  %v241_v4 = vadd.f32 %v240_v1, %v226_v61 }
  0x56   : > { %v206_v2 = vadd.f32 %v408_v59, %v205_v63  ;;  %v242_v6 = vadd.f32 %v241_v4, %v227_v0 }
  0x58   : > { %v207_v5 = vrot.slane %v206_v2, 4  ;;  %v243_v8 = vadd.f32 %v242_v6, %v228_v3 }
  0x5a   : > { %v208_v7 = vadd.f32 %v207_v5, %v206_v2  ;;  %v244_v10 = vrot.slane %v243_v8, 4 }
  0x5c   : > { %v209_v9 = vrot.slane %v208_v7, 2  ;;  %v245_v13 = vadd.f32 %v244_v10, %v243_v8 }
  0x5e   : > { %v210_v12 = vadd.f32 %v209_v9, %v208_v7  ;;  %v246_v15 = vrot.slane %v245_v13, 2 }
  0x60   : > { %v211_v14 = vrot.slane %v210_v12, 1  ;;  %v247_v17 = vadd.f32 %v246_v15, %v245_v13 }
  0x62   : > { %v212_v18 = vadd.f32 %v211_v14, %v210_v12  ;;  %v248_v19 = vrot.slane %v247_v17, 1 }
  0x64   : > { %v249_v20 = vadd.f32 %v248_v19, %v247_v17 }
  0x66   : > { %v255_v22 = vsel %vm252_vm0, %v212_v18, %v249_v20 }
  0x67   : > { %v257_v23 = vadd.f32 %v256_v21, %v255_v22 }
  0x69   : > { %258 = vst [vmem:[%s807_s19] sm:$0x3] %v257_v23 }
  0x6a   : > { %578 = shalt.err (!%p575_p1)
}
  0x6b   : > { %418 = dma.vmem_to_hbm [thread:$0]  (%p770_p12), %s273_s17, 32, %s275_s22, %s260_s13  }
  0x6c PF: > { %p429_p4 = scmp.ge.s32.totalorder %s673_s16, 2  ;;  %s286_s23 = sand.u32 1, %s633_s6  }
  0x6d   : > { %s287_s9 = scalar_lea.sflag [#allocation4], %s286_s23 }
  0x6e   : > { %p425_p5 = pnand %p429_p4, %p783_p2 }
  0x70   : > { %p426_p6 = pneg %p425_p5 }
  0x72   : > { %628 = dma.done.wait (%p426_p6), %s287_s9, 32  }
  0x73   : > { %630 = vsyncadd (%p426_p6), %s287_s9, 4294967264  ;;  %s17_s16 = sadd.s32 1, %s673_s16   ;;  %s888_s28 = sld [smem:[#allocation8_spill]] }
  0x74   : > { %p14_p8 = scmp.ge.s32.totalorder %s17_s16, 6   ;;  %s889_s11 = sld [smem:[#allocation11_spill]] }
  0x75   : > { %s890_s3 = sld [smem:[#allocation9_spill]]  ;;  %s892_s6 = smov %s637_s7 }
  0x76   : > { %s891_s19 = sld [smem:[#allocation10_spill]]  ;;  %s893_s7 = smov %s641_s8 }
  0x77   : > { %s894_s8 = smov %s775_s29  ;;  %s895_s9 = smov %s649_s10 }
  0x78   : > { %s897_s12 = smov %s665_s14  ;;  %s898_s13 = smov %s669_s15 }
  0x79   : > { %s896_s10 = smov %s888_s28  ;;  %16 = sbr.rel (!%p14_p8) target bundleno = 9 (0x9), region = 73 }
  0x7b   : > { %s899_s14 = smov %s890_s3 }
  0x7c   : > { %s900_s15 = smov %s891_s19 }
  0x7e   :  { %293 = vsyncpa [#allocation3], 1 }
  0x7f   :  { %295 = vsyncpa [#allocation3 + $0x1], 1 }
  0x80   :  { %296 = vsyncpa [#allocation4], 1 }
  0x81   :  { %298 = vsyncpa [#allocation4 + $0x1], 1 }

</bundles_post_ra>
